<compile_context>
chip_gen: v7x
topology: tpu7x:2x2x1
jax: 0.10.0
libtpu: 0.0.40
codegen_flags: <defaults>
</compile_context>

<pallas_src>
import jax
import jax.numpy as jnp
from jax.experimental import pallas as pl
from jax.experimental.pallas import tpu as pltpu


def residual_stack_kernel(x_ref, w1_ref, w2_ref, o_ref):
    # x_ref:  (L, C)                    f32 activations (one batch element)
    # w1_ref: (num_layers, 3*C, Hres)   bf16 fused 3-tap circular-conv weights
    # w2_ref: (num_layers, Hres, C)     bf16 1x1 conv weights
    # o_ref:  (L, C)                    f32 output
    L, C = x_ref.shape
    num_layers = w1_ref.shape[0]

    x = x_ref[...].astype(jnp.float32)

    for layer in range(num_layers):  # num_layers is small & static -> unrolled
        h = jnp.maximum(x, 0.0)  # ReLU (f32 on the VPU)

        # Circular shifts along L (sublane axis):
        #   h_prev[l] = h[(l-1) mod L],  h_next[l] = h[(l+1) mod L]
        h_prev = jnp.concatenate([h[L - 1:, :], h[:L - 1, :]], axis=0)
        h_next = jnp.concatenate([h[1:, :], h[:1, :]], axis=0)

        # Fuse the 3 conv taps into one K = 3*C matmul (single MXU push).
        h_cat = jnp.concatenate([h_prev, h, h_next], axis=-1)  # (L, 3C)
        h_cat = h_cat.astype(jnp.bfloat16)

        acc = jnp.dot(h_cat, w1_ref[layer],
                      preferred_element_type=jnp.float32)      # (L, Hres)
        h2 = jnp.maximum(acc, 0.0).astype(jnp.bfloat16)         # ReLU

        y = jnp.dot(h2, w2_ref[layer],
                    preferred_element_type=jnp.float32)         # (L, C)
        x = x + y                                                # residual add

    o_ref[...] = jnp.maximum(x, 0.0).astype(o_ref.dtype)        # final ReLU


def residual_stack_pallas(x_nlc, w1_cat, w2):
    N, L, C = x_nlc.shape
    num_layers, k3c, hres = w1_cat.shape

    return pl.pallas_call(
        residual_stack_kernel,
        out_shape=jax.ShapeDtypeStruct((N, L, C), x_nlc.dtype),
        grid_spec=pltpu.PrefetchScalarGridSpec(
            num_scalar_prefetch=0,
            grid=(N,),  # one batch element per step; parallel -> megacore shards
            in_specs=[
                # None squeezes the batch dim: kernel sees a 2-D (L, C) slab.
                pl.BlockSpec((None, L, C), lambda b: (b, 0, 0)),
                # Weight index_maps are constant across the grid (loaded once).
                pl.BlockSpec((num_layers, k3c, hres), lambda b: (0, 0, 0)),
                pl.BlockSpec((num_layers, hres, C), lambda b: (0, 0, 0)),
            ],
            out_specs=pl.BlockSpec((None, L, C), lambda b: (b, 0, 0)),
        ),
        compiler_params=pltpu.CompilerParams(
            dimension_semantics=("parallel",)),
    )(x_nlc, w1_cat, w2)


def residual_stack_ref(x_nlc, w1_cat, w2):
    # Pure-JAX reference mirroring the kernel math (bf16 MXU inputs, f32 acc).
    x = x_nlc.astype(jnp.float32)
    num_layers = w1_cat.shape[0]
    for layer in range(num_layers):
        h = jnp.maximum(x, 0.0)
        h_prev = jnp.roll(h, 1, axis=1)
        h_next = jnp.roll(h, -1, axis=1)
        h_cat = jnp.concatenate([h_prev, h, h_next], axis=-1).astype(jnp.bfloat16)
        acc = jnp.einsum("nlk,kh->nlh", h_cat, w1_cat[layer],
                         preferred_element_type=jnp.float32)
        h2 = jnp.maximum(acc, 0.0).astype(jnp.bfloat16)
        x = x + jnp.einsum("nlh,hc->nlc", h2, w2[layer],
                           preferred_element_type=jnp.float32)
    return jnp.maximum(x, 0.0)


if __name__ == "__main__":
    # Module hyperparameters (residual add requires in_channels == num_hiddens)
    in_channels = num_hiddens = 32
    num_residual_hiddens = 16
    num_residual_layers = 2
    N, L = 2, 16  # batch, sequence length (Conv1d spatial dim)

    key = jax.random.PRNGKey(0)
    k_x, k_w1, k_w2 = jax.random.split(key, 3)

    # PyTorch-convention tensors (deterministic synthetic weights)
    x_ncl = jax.random.normal(k_x, (N, in_channels, L), jnp.float32)
    # Conv1d(in_channels -> num_residual_hiddens, k=3): weight (out, in, 3)
    w1_pt = 0.1 * jax.random.normal(
        k_w1, (num_residual_layers, num_residual_hiddens, in_channels, 3),
        jnp.float32)
    # Conv1d(num_residual_hiddens -> num_hiddens, k=1): weight (out, in, 1)
    w2_pt = 0.1 * jax.random.normal(
        k_w2, (num_residual_layers, num_hiddens, num_residual_hiddens, 1),
        jnp.float32)

    # Re-layout for the kernel:
    #   x          -> channels-last (N, L, C)
    #   conv k=3   -> taps stacked along K: (layers, 3*C_in, Hres), bf16
    #                 tap order [k=0 (h[l-1]), k=1 (h[l]), k=2 (h[l+1])]
    #   conv k=1   -> (layers, Hres, C_out), bf16
    x_nlc = jnp.transpose(x_ncl, (0, 2, 1))
    w1_cat = jnp.concatenate(
        [jnp.transpose(w1_pt[:, :, :, k], (0, 2, 1)) for k in range(3)],
        axis=1).astype(jnp.bfloat16)
    w2 = jnp.transpose(w2_pt[..., 0], (0, 2, 1)).astype(jnp.bfloat16)

    out = residual_stack_pallas(x_nlc, w1_cat, w2)
    out = jax.block_until_ready(out)

    ref = residual_stack_ref(x_nlc, w1_cat, w2)
    assert out.shape == (N, L, num_hiddens)
    assert jnp.allclose(out, ref, rtol=1e-2, atol=1e-2), "mismatch vs JAX reference"

    print("KERNEL_OK")
</pallas_src>

<mosaic_0001>
module attributes {stable_mosaic.version = 11 : i64} {
  func.func @residual_stack_kernel(%arg0: i32, %arg1: memref<1x16x32xf32, #tpu.memory_space<vmem>>, %arg2: memref<2x96x16xbf16, #tpu.memory_space<vmem>>, %arg3: memref<2x16x32xbf16, #tpu.memory_space<vmem>>, %arg4: memref<1x16x32xf32, #tpu.memory_space<vmem>>) attributes {dimension_semantics = [#tpu.dimension_semantics<parallel>], iteration_bounds = array<i64: 2>, scalar_prefetch = 0 : i64, scratch_operands = 0 : i64, tpu.core_type = #tpu.core_type<tc>, window_params = [{transform_indices = @transform_0, window_bounds = array<i64: 1, 16, 32>}, {pipeline_mode = #tpu.pipeline_mode<synchronous>, transform_indices = @transform_1, window_bounds = array<i64: 2, 96, 16>}, {pipeline_mode = #tpu.pipeline_mode<synchronous>, transform_indices = @transform_2, window_bounds = array<i64: 2, 16, 32>}, {transform_indices = @transform_3, window_bounds = array<i64: 1, 16, 32>}]} {
    %c0 = arith.constant 0 : index
    %c0_0 = arith.constant 0 : index
    %c0_1 = arith.constant 0 : index
    %0 = vector.load %arg1[%c0, %c0_0, %c0_1] : memref<1x16x32xf32, #tpu.memory_space<vmem>>, vector<1x16x32xf32>
    %1 = vector.shape_cast %0 : vector<1x16x32xf32> to vector<16x32xf32>
    %cst = arith.constant 0.000000e+00 : f32
    %2 = vector.broadcast %cst : f32 to vector<16x32xf32>
    %3 = arith.maximumf %1, %2 : vector<16x32xf32>
    %4 = vector.extract_strided_slice %3 {offsets = [15, 0], sizes = [1, 32], strides = [1, 1]} : vector<16x32xf32> to vector<1x32xf32>
    %5 = vector.extract_strided_slice %3 {offsets = [0, 0], sizes = [15, 32], strides = [1, 1]} : vector<16x32xf32> to vector<15x32xf32>
    %6 = tpu.concatenate %4, %5 in 0 : vector<1x32xf32>, vector<15x32xf32> -> vector<16x32xf32>
    %7 = vector.extract_strided_slice %3 {offsets = [1, 0], sizes = [15, 32], strides = [1, 1]} : vector<16x32xf32> to vector<15x32xf32>
    %8 = vector.extract_strided_slice %3 {offsets = [0, 0], sizes = [1, 32], strides = [1, 1]} : vector<16x32xf32> to vector<1x32xf32>
    %9 = tpu.concatenate %7, %8 in 0 : vector<15x32xf32>, vector<1x32xf32> -> vector<16x32xf32>
    %10 = tpu.concatenate %6, %3, %9 in 1 : vector<16x32xf32>, vector<16x32xf32>, vector<16x32xf32> -> vector<16x96xf32>
    %11 = arith.truncf %10 : vector<16x96xf32> to vector<16x96xbf16>
    %c0_2 = arith.constant 0 : index
    %c0_3 = arith.constant 0 : index
    %c0_4 = arith.constant 0 : index
    %12 = vector.load %arg2[%c0_2, %c0_3, %c0_4] : memref<2x96x16xbf16, #tpu.memory_space<vmem>>, vector<1x96x16xbf16>
    %13 = vector.shape_cast %12 : vector<1x96x16xbf16> to vector<96x16xbf16>
    %cst_5 = arith.constant dense<0.000000e+00> : vector<16x16xf32>
    %14 = tpu.matmul %11, %13, %cst_5 {dimension_numbers = #tpu.dot_dimension_numbers<[1], [0], [0], [1], [0, 0, 1, 1], [], []>} : vector<16x96xbf16>, vector<96x16xbf16>, vector<16x16xf32> -> vector<16x16xf32>
    %cst_6 = arith.constant 0.000000e+00 : f32
    %15 = vector.broadcast %cst_6 : f32 to vector<16x16xf32>
    %16 = arith.maximumf %14, %15 : vector<16x16xf32>
    %17 = arith.truncf %16 : vector<16x16xf32> to vector<16x16xbf16>
    %c0_7 = arith.constant 0 : index
    %c0_8 = arith.constant 0 : index
    %c0_9 = arith.constant 0 : index
    %18 = vector.load %arg3[%c0_7, %c0_8, %c0_9] : memref<2x16x32xbf16, #tpu.memory_space<vmem>>, vector<1x16x32xbf16>
    %19 = vector.shape_cast %18 : vector<1x16x32xbf16> to vector<16x32xbf16>
    %cst_10 = arith.constant dense<0.000000e+00> : vector<16x32xf32>
    %20 = tpu.matmul %17, %19, %cst_10 {dimension_numbers = #tpu.dot_dimension_numbers<[1], [0], [0], [1], [0, 0, 1, 1], [], []>} : vector<16x16xbf16>, vector<16x32xbf16>, vector<16x32xf32> -> vector<16x32xf32>
    %21 = arith.addf %1, %20 : vector<16x32xf32>
    %cst_11 = arith.constant 0.000000e+00 : f32
    %22 = vector.broadcast %cst_11 : f32 to vector<16x32xf32>
    %23 = arith.maximumf %21, %22 : vector<16x32xf32>
    %24 = vector.extract_strided_slice %23 {offsets = [15, 0], sizes = [1, 32], strides = [1, 1]} : vector<16x32xf32> to vector<1x32xf32>
    %25 = vector.extract_strided_slice %23 {offsets = [0, 0], sizes = [15, 32], strides = [1, 1]} : vector<16x32xf32> to vector<15x32xf32>
    %26 = tpu.concatenate %24, %25 in 0 : vector<1x32xf32>, vector<15x32xf32> -> vector<16x32xf32>
    %27 = vector.extract_strided_slice %23 {offsets = [1, 0], sizes = [15, 32], strides = [1, 1]} : vector<16x32xf32> to vector<15x32xf32>
    %28 = vector.extract_strided_slice %23 {offsets = [0, 0], sizes = [1, 32], strides = [1, 1]} : vector<16x32xf32> to vector<1x32xf32>
    %29 = tpu.concatenate %27, %28 in 0 : vector<15x32xf32>, vector<1x32xf32> -> vector<16x32xf32>
    %30 = tpu.concatenate %26, %23, %29 in 1 : vector<16x32xf32>, vector<16x32xf32>, vector<16x32xf32> -> vector<16x96xf32>
    %31 = arith.truncf %30 : vector<16x96xf32> to vector<16x96xbf16>
    %c1 = arith.constant 1 : index
    %c0_12 = arith.constant 0 : index
    %c0_13 = arith.constant 0 : index
    %32 = vector.load %arg2[%c1, %c0_12, %c0_13] : memref<2x96x16xbf16, #tpu.memory_space<vmem>>, vector<1x96x16xbf16>
    %33 = vector.shape_cast %32 : vector<1x96x16xbf16> to vector<96x16xbf16>
    %cst_14 = arith.constant dense<0.000000e+00> : vector<16x16xf32>
    %34 = tpu.matmul %31, %33, %cst_14 {dimension_numbers = #tpu.dot_dimension_numbers<[1], [0], [0], [1], [0, 0, 1, 1], [], []>} : vector<16x96xbf16>, vector<96x16xbf16>, vector<16x16xf32> -> vector<16x16xf32>
    %cst_15 = arith.constant 0.000000e+00 : f32
    %35 = vector.broadcast %cst_15 : f32 to vector<16x16xf32>
    %36 = arith.maximumf %34, %35 : vector<16x16xf32>
    %37 = arith.truncf %36 : vector<16x16xf32> to vector<16x16xbf16>
    %c1_16 = arith.constant 1 : index
    %c0_17 = arith.constant 0 : index
    %c0_18 = arith.constant 0 : index
    %38 = vector.load %arg3[%c1_16, %c0_17, %c0_18] : memref<2x16x32xbf16, #tpu.memory_space<vmem>>, vector<1x16x32xbf16>
    %39 = vector.shape_cast %38 : vector<1x16x32xbf16> to vector<16x32xbf16>
    %cst_19 = arith.constant dense<0.000000e+00> : vector<16x32xf32>
    %40 = tpu.matmul %37, %39, %cst_19 {dimension_numbers = #tpu.dot_dimension_numbers<[1], [0], [0], [1], [0, 0, 1, 1], [], []>} : vector<16x16xbf16>, vector<16x32xbf16>, vector<16x32xf32> -> vector<16x32xf32>
    %41 = arith.addf %21, %40 : vector<16x32xf32>
    %cst_20 = arith.constant 0.000000e+00 : f32
    %42 = vector.broadcast %cst_20 : f32 to vector<16x32xf32>
    %43 = arith.maximumf %41, %42 : vector<16x32xf32>
    %c0_21 = arith.constant 0 : index
    %c0_22 = arith.constant 0 : index
    %c0_23 = arith.constant 0 : index
    %44 = vector.load %arg4[%c0_21, %c0_22, %c0_23] : memref<1x16x32xf32, #tpu.memory_space<vmem>>, vector<1x16x32xf32>
    %45 = vector.shape_cast %44 : vector<1x16x32xf32> to vector<16x32xf32>
    %46 = vector.shape_cast %43 : vector<16x32xf32> to vector<1x16x32xf32>
    tpu.vector_store %arg4[%c0_21, %c0_22, %c0_23], %46 {strides = array<i32>} : memref<1x16x32xf32, #tpu.memory_space<vmem>>, vector<1x16x32xf32>,
    return
  }
  func.func @transform_0(%arg0: i32) -> (i32, i32, i32) {
    %c0_i32 = arith.constant 0 : i32
    %c0_i32_0 = arith.constant 0 : i32
    %c0_i32_1 = arith.constant 0 : i32
    return %arg0, %c0_i32, %c0_i32_0 : i32, i32, i32
  }
  func.func @transform_1(%arg0: i32) -> (i32, i32, i32) {
    %c0_i32 = arith.constant 0 : i32
    %c0_i32_0 = arith.constant 0 : i32
    %c0_i32_1 = arith.constant 0 : i32
    %c0_i32_2 = arith.constant 0 : i32
    return %c0_i32, %c0_i32_0, %c0_i32_1 : i32, i32, i32
  }
  func.func @transform_2(%arg0: i32) -> (i32, i32, i32) {
    %c0_i32 = arith.constant 0 : i32
    %c0_i32_0 = arith.constant 0 : i32
    %c0_i32_1 = arith.constant 0 : i32
    %c0_i32_2 = arith.constant 0 : i32
    return %c0_i32, %c0_i32_0, %c0_i32_1 : i32, i32, i32
  }
  func.func @transform_3(%arg0: i32) -> (i32, i32, i32) {
    %c0_i32 = arith.constant 0 : i32
    %c0_i32_0 = arith.constant 0 : i32
    %c0_i32_1 = arith.constant 0 : i32
    return %arg0, %c0_i32, %c0_i32_0 : i32, i32, i32
  }
}

</mosaic_0001>

<bundles_post_ra>
// kernel: tpu_custom_call.1
= control target key start
LH: loop header
LB: loop body
LE: loop exit
PB: predicated region body
PF: predicated region fallthrough
CT: control target
= control target key end

     0   :  { %8 = vsyncpa [#allocation3], 0  ;;  %s1107_s0 = inlined_call_operand.vmem [shape: f32[2,16,32], index: 0, kind: input, shape index: {}]   ;;  %s1108_s1 = inlined_call_operand.vmem [shape: bf16[2,96,16], index: 1, kind: input, shape index: {}]   ;;  %s1109_s2 = inlined_call_operand.vmem [shape: bf16[2,16,32], index: 2, kind: input, shape index: {}]   ;;  %s1110_s3 = inlined_call_operand.hbm [shape: f32[2,16,32], index: 3, kind: output, shape index: {}]  }
   0x1   :  { %10 = vsyncpa [#allocation3 + $0x1], 0  ;;  %s906_s12 = smov 0   ;;  %s908_s13 = smov 0  }
   0x2   :  { %s910_s14 = smov 0   ;;  %s912_s15 = smov 0  }
   0x3 LB: > { %s927_s16 = sadd.s32 4294967295, %s877_s15   ;;  %s628_s17 = sadd.s32 4294967294, %s877_s15   ;;  %s877_s15 = sphi %s912_s15, %s1116_s15   ;;  %s873_s14 = sphi %s910_s14, %s1115_s14   ;;  %s869_s13 = sphi %s908_s13, %s1114_s13   ;;  %s865_s12 = sphi %s906_s12, %s1113_s12  }
   0x4   : > { %s931_s18 = sadd.s32 1, %s877_s15   ;;  %s91_s19 = sadd.s32 1, %s873_s14 }
   0x5   : > { %s88_s20 = ssub.s32 %s877_s15, %s931_s18  ;;  %p101_p0 = scmp.ne.s32.totalorder %s873_s14, %s869_s13 }
   0x6   : > { %p89_p1 = scmp.eq.s32.totalorder %s88_s20, 0  ;;  %p102_p2 = scmp.eq.s32.totalorder %s927_s16, 1 }
   0x7   : > { %p107_p3 = scmp.ne.s32.totalorder %s869_s13, %s865_s12  ;;  %p108_p4 = scmp.eq.s32.totalorder %s628_s17, 1 }
   0x8   : > { %s942_s21 = scalar_select %p89_p1, %s873_s14, %s91_s19  }
   0x9   : > { %p944_p5 = por %p102_p2, %p101_p0  ;;  %p948_p6 = por %p108_p4, %p107_p3 }
   0xa   : > { %p631_p7 = scmp.ge.s32.totalorder %s877_s15, 1  ;;  %p140_p8 = scmp.lt.s32.totalorder %s877_s15, 3 }
   0xc   : > { %p141_p9 = pnand %p631_p7, %p140_p8 }
   0xd   : > { %p164_p10 = scmp.lt.s32.totalorder (!%p141_p9), %s927_s16, 1  ;;  %v879_v0 = vmov (!%p141_p9), 0.0   ;;  %v801_v1 = vld [vmem:[%s1108_s1] sm:$0xff] (!%p141_p9)   ;;  %v802_v2 = vld [vmem:[%s1108_s1 + $0x8] sm:$0xff] (!%p141_p9)   ;;  %vm184_vm0 = vcmask (!%p141_p9), 1046528   ;;  %v803_v3 = vld [vmem:[%s1108_s1 + $0x10] sm:$0xff] (!%p141_p9)  }
   0xe   : > { %144 = sbr.rel (%p141_p9) target bundleno = 1167 (0x48f), region = 32  ;;  %692 = vmatprep.subr.bf16.mxu0 (!%p141_p9), %v879_v0  ;;  %708 = vmatprep.subr.bf16.mxu1 (!%p141_p9), %v879_v0  ;;  %vm178_vm1 = vcmask (!%p141_p9), 1040384   ;;  %vm880_vm2 = vmmov (!%p141_p9), 0   ;;  %v804_v13 = vld [vmem:[%s1108_s1 + $0x18] sm:$0xff] (!%p141_p9)   ;;  %s881_s10 = smov (!%p141_p9), 32   ;;  %v805_v19 = vld [vmem:[%s1108_s1 + $0x20] sm:$0xff] (!%p141_p9)  }
   0xf   : > { %693 = vmatpush3.bf16.msra.mxu0 (!%p141_p9), %v801_v1  ;;  %704 = vmatprep.mubr.msk.bf16.mxu0 (!%p141_p9), %vm880_vm2, %v879_v0  ;;  %s882_s11 = smov (!%p141_p9), 64   ;;  %v806_v20 = vld [vmem:[%s1108_s1 + $0x28] sm:$0xff] (!%p141_p9)   ;;  %vm204_vm3 = vcmask (!%p141_p9), 261120   ;;  %vm207_vm4 = vcmask (!%p141_p9), 523264   ;;  %vm259_vm5 = vcmask (!%p141_p9), 785408   ;;  %v807_v32 = vld [vmem:[%s1109_s2] sm:$0xff] (!%p141_p9)  }
  0x10   : > { %694 = vmatprep.subr.bf16.mxu0 (!%p141_p9), %v879_v0  ;;  %710 = vmatprep.mubr.msk.bf16.mxu1 (!%p141_p9), %vm880_vm2, %v879_v0  ;;  %vm315_vm6 = vcmask (!%p141_p9), 130048   ;;  %v808_v40 = vld [vmem:[%s1108_s1 + $0x30] sm:$0xff] (!%p141_p9)   ;;  %v809_v41 = vld [vmem:[%s1108_s1 + $0x38] sm:$0xff] (!%p141_p9)   ;;  %v810_v42 = vld [vmem:[%s1108_s1 + $0x40] sm:$0xff] (!%p141_p9)   ;;  %s673_s27 = sshll.u32 (!%p141_p9), %s927_s16, 8 }
  0x11   : > { %709 = vmatpush3.bf16.msra.mxu1 (!%p141_p9), %v807_v32  ;;  %v811_v43 = vld [vmem:[%s1108_s1 + $0x48] sm:$0xff] (!%p141_p9)   ;;  %v812_v44 = vld [vmem:[%s1108_s1 + $0x50] sm:$0xff] (!%p141_p9)   ;;  %v813_v46 = vld [vmem:[%s1108_s1 + $0x58] sm:$0xff] (!%p141_p9)   ;;  %s1062_s30 = scalar_lea.hbm (!%p141_p9), %s1110_s3, %s673_s27 }
  0x12   : > { %714 = vmatprep.subr.bf16.mxu1 (!%p141_p9), %v879_v0  ;;  %v814_v54 = vld [vmem:[%s1109_s2 + $0x8] sm:$0xff] (!%p141_p9)  }
  0x13   : > { %695 = vmatpush3.bf16.msra.mxu0 (!%p141_p9), %v802_v2 }
  0x14   : > { %696 = vmatprep.subr.bf16.mxu0 (!%p141_p9), %v879_v0 }
  0x15   : > { %s165_s26 = scalar_select %p164_p10, %s927_s16, 1 }
  0x17   : > { %s672_s29 = sshll.u32 %s165_s26, 4  ;;  %697 = vmatpush3.bf16.msra.mxu0 %v803_v3 }
  0x18   : > { %s168_s5 = scalar_lea.vmem %s1107_s0, %s672_s29  ;;  %698 = vmatprep.subr.bf16.mxu0 %v879_v0 }
  0x19   : > { %v971_v4 = vld [vmem:[%s168_s5] sm:$0xff]  ;;  %v973_v5 = vld [vmem:[%s168_s5 + $0x8] sm:$0xff]  ;;  %s883_s5 = smov [#allocation2]  }
  0x1a   : > { %v172_v6 = vmax.f32 %v971_v4, 0.0  ;;  %v173_v7 = vmax.f32 %v973_v5, 0.0  ;;  %s819_s6 = sshll.u32 %s883_s5, 4  ;;  %s820_s6 = int_to_ptr.vmem [resolvable:$false] %s819_s6 }
  0x1b   : > { %699 = vmatpush3.bf16.msra.mxu0 %v804_v13  ;;  %s821_s7 = scalar_lea.vmem %s820_s6, 512 }
  0x1c   : > { %v175_v8 = vrot.slane %v173_v7, 7  ;;  %v781_v9 = vpack.i.bf16 %v173_v7, %v172_v6  ;;  %v179_v10 = vrot.slane %v172_v6, 7  ;;  %v185_v11 = vrot.slane %v172_v6, 1  ;;  %700 = vmatprep.subr.bf16.mxu0 %v879_v0 }
  0x1d   : > { %v186_v12 = vrot.slane %v173_v7, 1 }
  0x1e   : > { %782 = vrot.lane.b32.xlu0 %v781_v9, %s881_s10  ;;  %v180_v14 = vsel %vm178_vm1, %v179_v10, %v175_v8  ;;  %v183_v15 = vsel %vm178_vm1, %v175_v8, %v179_v10 }
  0x1f   : > { %v187_v16 = vsel %vm184_vm0, %v185_v11, %v186_v12  ;;  %v190_v17 = vsel %vm184_vm0, %v186_v12, %v185_v11  ;;  %701 = vmatpush3.bf16.msra.mxu0 %v805_v19 }
  0x20   : > { %v786_v18 = vpack.i.bf16 %v190_v17, %v187_v16  ;;  %702 = vmatprep.subr.bf16.mxu0 %v879_v0 }
  0x22   : > { %787 = vrot.lane.b32.xlu0 %v786_v18, %s882_s11 }
  0x23   : > { %703 = vmatpush3.bf16.msra.mxu0 %v806_v20 }
  0x24   : > { %730 = vmatprep.subr.bf16.mxu0 %v879_v0 }
  0x90   : > { %v783_v21 = vpop.permute.xlu0 %782 }
  0x91   : > { %v785_v22 = vunpack.i.h.bf16 %v783_v21  ;;  %v784_v23 = vunpack.i.l.bf16 %v783_v21 }
  0x93   : > { %v205_v27 = vsel %vm204_vm3, %v183_v15, %v784_v23  ;;  %v206_v28 = vsel %vm204_vm3, %v180_v14, %v785_v22 }
  0x94   : > { %v788_v24 = vpop.permute.xlu0 %787 }
  0x95   : > { %v790_v25 = vunpack.i.h.bf16 %v788_v24  ;;  %v789_v26 = vunpack.i.l.bf16 %v788_v24 }
  0x97   : > { %v208_v29 = vsel %vm207_vm4, %v205_v27, %v789_v26  ;;  %v209_v30 = vsel %vm207_vm4, %v206_v28, %v790_v25 }
  0x98   : > { %v210_v31 = vpack.c.bf16 %v209_v30, %v208_v29 }
  0x9a   : > { %705 = vmatmul.mubr.msk.bf16.vlgmr.msra.gmra.mrb[0].mxu0 %vm259_vm5, %v210_v31 }
  0x9b   : > { %732 = vmatprep.mubr.msk.bf16.mxu0 %vm880_vm2, %v879_v0  ;;  %731 = vmatpush3.bf16.msra.mxu0 %v814_v54 }
 0x16d   : > { %v297_v33 = vpop.f32.mrb[0].mxu0 }
 0x16e   : > { %v706_v34 = vpop.f32.mrb[1].mxu0  ;;  %v304_v36 = vmax.f32 %v297_v33, 0.0 }
 0x16f   : > { %v300_v35 = vpop.f32.mrb[2].mxu0 }
 0x170   : > { %v305_v37 = vmax.f32 %v300_v35, 0.0  ;;  %v707_v38 = vpop.f32.mrb[3].mxu0 }
 0x172   : > { %v306_v39 = vpack.c.bf16 %v305_v37, %v304_v36 }
 0x174   : > { %711 = vmatmul.mubr.msk.bf16.vlgmr.msra.gmra.mrb[0].mxu1 %vm315_vm6, %v306_v39 }
 0x175   : > { %726 = vmatprep.mubr.msk.bf16.mxu1 %vm880_vm2, %v879_v0  ;;  %715 = vmatpush3.bf16.msra.mxu1 %v808_v40 }
 0x176   : > { %716 = vmatprep.subr.bf16.mxu1 %v879_v0 }
 0x179   : > { %717 = vmatpush3.bf16.msra.mxu1 %v809_v41 }
 0x17a   : > { %718 = vmatprep.subr.bf16.mxu1 %v879_v0 }
 0x17d   : > { %719 = vmatpush3.bf16.msra.mxu1 %v810_v42 }
 0x17e   : > { %720 = vmatprep.subr.bf16.mxu1 %v879_v0 }
 0x181   : > { %721 = vmatpush3.bf16.msra.mxu1 %v811_v43 }
 0x182   : > { %722 = vmatprep.subr.bf16.mxu1 %v879_v0 }
 0x185   : > { %723 = vmatpush3.bf16.msra.mxu1 %v812_v44 }
 0x186   : > { %724 = vmatprep.subr.bf16.mxu1 %v879_v0 }
 0x189   : > { %725 = vmatpush3.bf16.msra.mxu1 %v813_v46 }
 0x247   : > { %v353_v45 = vpop.f32.mrb[0].mxu1 }
 0x248   : > { %v360_v47 = vadd.f32 %v353_v45, %v971_v4  ;;  %v712_v48 = vpop.f32.mrb[1].mxu1 }
 0x249   : > { %v356_v49 = vpop.f32.mrb[2].mxu1 }
 0x24a   : > { %v362_v50 = vmax.f32 %v360_v47, 0.0  ;;  %v361_v51 = vadd.f32 %v356_v49, %v973_v5  ;;  %v713_v52 = vpop.f32.mrb[3].mxu1 }
 0x24c   : > { %v363_v53 = vmax.f32 %v361_v51, 0.0  ;;  %v368_v55 = vrot.slane %v362_v50, 7  ;;  %v373_v56 = vrot.slane %v362_v50, 1 }
 0x24e   : > { %v365_v57 = vrot.slane %v363_v53, 7  ;;  %v374_v58 = vrot.slane %v363_v53, 1  ;;  %v791_v59 = vpack.i.bf16 %v363_v53, %v362_v50 }
 0x250   : > { %792 = vrot.lane.b32.xlu1 %v791_v59, %s881_s10  ;;  %v375_v60 = vsel %vm184_vm0, %v373_v56, %v374_v58  ;;  %v378_v61 = vsel %vm184_vm0, %v374_v58, %v373_v56  ;;  %v369_v62 = vsel %vm178_vm1, %v368_v55, %v365_v57  ;;  %v372_v63 = vsel %vm178_vm1, %v365_v57, %v368_v55  ;;  %s161_s10 = sand.u32 1, %s869_s13  }
 0x251   : > { %v796_v0 = vpack.i.bf16 %v378_v61, %v375_v60  ;;  %s1066_s16 = scalar_lea.sflag [#allocation3], %s161_s10 }
 0x254   : > { %797 = vrot.lane.b32.xlu1 %v796_v0, %s882_s11  ;;  %s632_s11 = sshll.u32 %s161_s10, 4 }
 0x255   : > { %s163_s25 = scalar_lea.vmem [#allocation2], %s632_s11 }
 0x256   : > { %s566_s26 = sshll.u32 %s163_s25, 4  ;;  %s1057_s26 = int_to_ptr.vmem [resolvable:$true] %s566_s26 }
 0x257   : > { %s815_s4 = scalar_lea.vmem %s1057_s26, 256  ;;  %p822_p0 = scmp.lt.s32.totalorder %s1057_s26, %s820_s6 }
 0x258   : > { %p816_p11 = scmp.ne.s32.totalorder %s1057_s26, %s815_s4  ;;  %p823_p1 = scmp.lt.s32.totalorder %s821_s7, %s815_s4 }
 0x25a   : > { %p817_p12 = pnand %p816_p11, %p944_p5  ;;  %p824_p2 = por %p823_p1, %p822_p0 }
 0x25c   : > { %p818_p13 = pneg %p817_p12 }
 0x25e   : > { %p825_p3 = pnand %p824_p2, %p818_p13 }
 0x2c2   : > { %v793_v1 = vpop.permute.xlu1 %792 }
 0x2c3   : > { %v795_v2 = vunpack.i.h.bf16 %v793_v1  ;;  %v794_v3 = vunpack.i.l.bf16 %v793_v1 }
 0x2c5   : > { %v392_v7 = vsel %vm204_vm3, %v372_v63, %v794_v3  ;;  %v393_v8 = vsel %vm204_vm3, %v369_v62, %v795_v2 }
 0x2c6   : > { %v798_v4 = vpop.permute.xlu1 %797 }
 0x2c7   : > { %v800_v5 = vunpack.i.h.bf16 %v798_v4  ;;  %v799_v6 = vunpack.i.l.bf16 %v798_v4 }
 0x2c9   : > { %v394_v9 = vsel %vm207_vm4, %v392_v7, %v799_v6  ;;  %v395_v10 = vsel %vm207_vm4, %v393_v8, %v800_v5 }
 0x2ca   : > { %v396_v11 = vpack.c.bf16 %v395_v10, %v394_v9 }
 0x2cc   : > { %727 = vmatmul.mubr.msk.bf16.vlgmr.msra.gmra.mrb[4].mxu1 %vm259_vm5, %v396_v11 }
 0x39f   : > { %v483_v12 = vpop.f32.mrb[4].mxu1 }
 0x3a0   : > { %v728_v13 = vpop.f32.mrb[5].mxu1  ;;  %v490_v15 = vmax.f32 %v483_v12, 0.0 }
 0x3a1   : > { %v486_v14 = vpop.f32.mrb[6].mxu1 }
 0x3a2   : > { %v491_v16 = vmax.f32 %v486_v14, 0.0  ;;  %v729_v17 = vpop.f32.mrb[7].mxu1 }
 0x3a4   : > { %v492_v18 = vpack.c.bf16 %v491_v16, %v490_v15 }
 0x3a6   : > { %733 = vmatmul.mubr.msk.bf16.vlgmr.msra.gmra.mrb[4].mxu0 %vm315_vm6, %v492_v18 }
 0x479   : > { %v539_v19 = vpop.f32.mrb[4].mxu0 }
 0x47a   : > { %v546_v20 = vadd.f32 %v539_v19, %v360_v47  ;;  %v734_v21 = vpop.f32.mrb[5].mxu0 }
 0x47b   : > { %v542_v22 = vpop.f32.mrb[6].mxu0 }
 0x47c   : > { %v548_v23 = vmax.f32 %v546_v20, 0.0  ;;  %v547_v24 = vadd.f32 %v542_v22, %v361_v51  ;;  %v735_v25 = vpop.f32.mrb[7].mxu0 }
 0x47e   : > { %550 = vst.msk [vmem:[%s163_s25] sm:$0xff] %vm204_vm3, %v548_v23  ;;  %v549_v26 = vmax.f32 %v547_v24, 0.0 }
 0x480   : > { %551 = vst.msk [vmem:[%s163_s25 + $0x8] sm:$0xff] %vm204_vm3, %v549_v26 }
 0x481   : > { %828 = shalt.err (!%p825_p3)
}
 0x482   : > { %s829_s8 = scalar_lea.hbm %s1062_s30, 256  ;;  %s833_s19 = scalar_lea.hbm %s1110_s3, 512 }
 0x483   : > { %p830_p4 = scmp.ne.s32.totalorder %s1062_s30, %s829_s8  ;;  %p834_p9 = scmp.lt.u32.totalorder %s1062_s30, %s1110_s3 }
 0x484   : > { %p835_p10 = scmp.lt.u32.totalorder %s833_s19, %s829_s8  ;;  %p837_p12 = scmp.lt.u32.totalorder %s829_s8, %s1062_s30 }
 0x485   : > { %p831_p7 = pnand %p830_p4, %p944_p5 }
 0x486   : > { %p836_p11 = por %p835_p10, %p834_p9 }
 0x487   : > { %p832_p8 = pneg %p831_p7 }
 0x488   : > { %p838_p13 = por %p837_p12, %p836_p11 }
 0x48a   : > { %p839_p0 = pnand %p838_p13, %p832_p8 }
 0x48c   : > { %842 = shalt.err (!%p839_p0)
}
 0x48d   : > { %s884_s10 = smov 128   ;;  %s885_s11 = smov 8  }
 0x48e   : > { %736 = dma.vmem_to_hbm [thread:$0]  (%p944_p5), %s1057_s26, 256, %s1062_s30, %s1066_s16, %s884_s10, %s884_s10, %s885_s11  }
 0x48f PF: > { %p742_p1 = scmp.ge.s32.totalorder %s877_s15, 2  ;;  %s581_s25 = sand.u32 1, %s865_s12  }
 0x490   : > { %s582_s27 = scalar_lea.sflag [#allocation3], %s581_s25 }
 0x491   : > { %p739_p2 = pnand %p742_p1, %p948_p6 }
 0x493   : > { %860 = dma.done.wait (!%p739_p2), %s582_s27, 256  }
 0x494   : > { %862 = vsyncadd (!%p739_p2), %s582_s27, 4294967040  ;;  %p13_p3 = scmp.ge.s32.totalorder %s931_s18, 4   ;;  %s1113_s12 = smov %s869_s13 }
 0x495   : > { %s1114_s13 = smov %s873_s14  ;;  %s1115_s14 = smov %s942_s21 }
 0x496   : > { %s1116_s15 = smov %s931_s18  ;;  %15 = sbr.rel (!%p13_p3) target bundleno = 3 (0x3), region = 69 }
 0x49d   :  { %587 = vsyncpa [#allocation3], 1 }
 0x49e   :  { %589 = vsyncpa [#allocation3 + $0x1], 1 }

</bundles_post_ra>
